<compile_context>
chip_gen: v7x
topology: tpu7x:2x2x1
jax: 0.10.0
libtpu: 0.0.40
codegen_flags: <defaults>
</compile_context>

<pallas_src>
import jax
import jax.numpy as jnp
from jax import lax
from jax.experimental import pallas as pl
from jax.experimental.pallas import tpu as pltpu


def gru_seq_kernel(gi_ref, whh_ref, bhn_ref, out_ref):
    """Single-invocation GRU recurrence (everything resident in VMEM).

    gi_ref : (3, T*B, H)  gate-major [r, z, n] input projection, time collapsed into
                          the sublane axis; b_ih and the foldable recurrent biases
                          (b_hr, b_hz) are already added.
    whh_ref: (H, 3H)      fused recurrent weight W_hh^T (one MXU push per step).
    bhn_ref: (1, H)       b_hn (must stay inside the r * (.) term; not foldable).
    out_ref: (B, T*H)     per-step hidden states, lane-dense; written with ONE
                          unmasked full-block store at the end.
    """
    H = gi_ref.shape[2]
    B = out_ref.shape[0]
    T = gi_ref.shape[1] // B

    whh = whh_ref[...]                                   # (H, 3H) resident weight
    bhn = jnp.broadcast_to(bhn_ref[...], (B, H))         # hoisted: broadcast once

    h = jnp.zeros((B, H), jnp.float32)
    hs = []
    # TODO(synk): for large T switch to lax.fori_loop (unroll=2-4) or a T-chunked
    # "arbitrary" grid axis; a full Python unroll eventually spills past 64 vregs.
    for t in range(T):                                   # static T -> fully unrolled
        row = t * B                                      # static sublane offset
        gi_r = gi_ref[0, row:row + B, :]
        gi_z = gi_ref[1, row:row + B, :]
        gi_n = gi_ref[2, row:row + B, :]
        # One fused 3-gate matmul per step (was 3 separate MXU pushes).
        gh = jnp.dot(h, whh, preferred_element_type=jnp.float32)    # (B, 3H)
        r = jax.nn.sigmoid(gi_r + gh[:, :H])
        z = jax.nn.sigmoid(gi_z + gh[:, H:2 * H])
        n = jnp.tanh(gi_n + r * (gh[:, 2 * H:] + bhn))
        h = n + z * (h - n)                              # == (1 - z) * n + z * h
        hs.append(h)

    # Single lane-dense store: last dim = T*H (multiple of 128) -> unmasked vst.
    out_ref[...] = jnp.concatenate(hs, axis=1).astype(out_ref.dtype)


def encoder_rnn_forward(tokens, emb, w_ih, w_hh, b_ih, b_hh):
    """tokens: (B, T) int32.  Returns (output (B, T, H), hidden (1, B, H))."""
    B, T = tokens.shape
    H = emb.shape[1]

    # --- glue: embedding lookup; nn.Dropout(p=0.1) is identity in eval mode ---
    embedded = jnp.take(emb, tokens, axis=0)                         # (B, T, H)

    # Hoist the h-independent input projection out of the recurrence, gate-major,
    # with time collapsed into the sublane axis.  Fold b_ih + b_hr + b_hz here
    # (b_hn is NOT foldable: PyTorch keeps it inside r * (W_hn h + b_hn)).
    w_ih_g = w_ih.reshape(3, H, H)                                   # (gate, out, in)
    b_hh_g = b_hh.reshape(3, H)
    b_fold = b_ih.reshape(3, H).at[0].add(b_hh_g[0]).at[1].add(b_hh_g[1])
    gi = jnp.einsum("bti,goi->gtbo", embedded, w_ih_g,
                    precision=lax.Precision.HIGHEST) + b_fold[:, None, None, :]
    gi = gi.reshape(3, T * B, H)                                     # contiguous reshape

    whh_cat = w_hh.T                                                 # (H, 3H) fused gates
    b_hn = b_hh_g[2].reshape(1, H)

    out_flat = pl.pallas_call(
        gru_seq_kernel,
        out_shape=jax.ShapeDtypeStruct((B, T * H), jnp.float32),
        in_specs=[
            pl.BlockSpec(memory_space=pltpu.MemorySpace.VMEM),       # gi (resident)
            pl.BlockSpec(memory_space=pltpu.MemorySpace.VMEM),       # fused W_hh^T
            pl.BlockSpec(memory_space=pltpu.MemorySpace.VMEM),       # b_hn
        ],
        out_specs=pl.BlockSpec(memory_space=pltpu.MemorySpace.VMEM), # (B, T*H)
    )(gi, whh_cat, b_hn)

    output = out_flat.reshape(B, T, H)                               # free, row-major
    hidden = output[:, T - 1, :][None]                               # (1, B, H)
    return output, hidden


def encoder_rnn_reference(tokens, emb, w_ih, w_hh, b_ih, b_hh):
    """Pure-JAX reference (lax.scan) with PyTorch GRU semantics."""
    embedded = jnp.take(emb, tokens, axis=0)                         # (B, T, H)
    B, T, H = embedded.shape
    x_tbh = jnp.transpose(embedded, (1, 0, 2))

    def step(h, x):
        gi = jnp.dot(x, w_ih.T, precision=lax.Precision.HIGHEST) + b_ih
        gh = jnp.dot(h, w_hh.T, precision=lax.Precision.HIGHEST) + b_hh
        i_r, i_z, i_n = gi[:, :H], gi[:, H:2 * H], gi[:, 2 * H:]
        h_r, h_z, h_n = gh[:, :H], gh[:, H:2 * H], gh[:, 2 * H:]
        r = jax.nn.sigmoid(i_r + h_r)
        z = jax.nn.sigmoid(i_z + h_z)
        n = jnp.tanh(i_n + r * h_n)
        h_new = (1.0 - z) * n + z * h
        return h_new, h_new

    h0 = jnp.zeros((B, H), jnp.float32)
    hT, ys = lax.scan(step, h0, x_tbh)
    return jnp.transpose(ys, (1, 0, 2)), hT[None]


if __name__ == "__main__":
    # Small shapes consistent with the module: vocab=20, hidden=32, batch=2, seq=8.
    V, H, B, T = 20, 32, 2, 8
    key = jax.random.PRNGKey(0)
    k_emb, k_wih, k_whh, k_bih, k_bhh, k_tok = jax.random.split(key, 6)

    bound = 1.0 / jnp.sqrt(H)
    emb = jax.random.normal(k_emb, (V, H), jnp.float32)                   # nn.Embedding ~ N(0,1)
    w_ih = jax.random.uniform(k_wih, (3 * H, H), jnp.float32, -bound, bound)
    w_hh = jax.random.uniform(k_whh, (3 * H, H), jnp.float32, -bound, bound)
    b_ih = jax.random.uniform(k_bih, (3 * H,), jnp.float32, -bound, bound)
    b_hh = jax.random.uniform(k_bhh, (3 * H,), jnp.float32, -bound, bound)
    tokens = jax.random.randint(k_tok, (B, T), 0, V, dtype=jnp.int32)

    out, hidden = jax.jit(encoder_rnn_forward)(tokens, emb, w_ih, w_hh, b_ih, b_hh)
    jax.block_until_ready((out, hidden))

    ref_out, ref_hidden = encoder_rnn_reference(tokens, emb, w_ih, w_hh, b_ih, b_hh)
    assert out.shape == (B, T, H) and hidden.shape == (1, B, H)
    assert jnp.allclose(out, ref_out, atol=1e-5, rtol=1e-5)
    assert jnp.allclose(hidden, ref_hidden, atol=1e-5, rtol=1e-5)

    print("KERNEL_OK")
</pallas_src>

<mosaic_0001>
module attributes {stable_mosaic.version = 11 : i64} {
  func.func @gru_seq_kernel(%arg0: memref<3x16x32xf32, #tpu.memory_space<vmem>>, %arg1: memref<32x96xf32, #tpu.memory_space<vmem>>, %arg2: memref<1x32xf32, #tpu.memory_space<vmem>>, %arg3: memref<2x256xf32, #tpu.memory_space<vmem>>) attributes {dimension_semantics = [], scalar_prefetch = 0 : i64, scratch_operands = 0 : i64, tpu.core_type = #tpu.core_type<tc>} {
    %c0 = arith.constant 0 : index
    %c0_0 = arith.constant 0 : index
    %0 = vector.load %arg1[%c0, %c0_0] : memref<32x96xf32, #tpu.memory_space<vmem>>, vector<32x96xf32>
    %c0_1 = arith.constant 0 : index
    %c0_2 = arith.constant 0 : index
    %1 = vector.load %arg2[%c0_1, %c0_2] : memref<1x32xf32, #tpu.memory_space<vmem>>, vector<1x32xf32>
    %2 = vector.shape_cast %1 : vector<1x32xf32> to vector<1x32xf32>
    %3 = vector.broadcast %2 : vector<1x32xf32> to vector<2x32xf32>
    %cst = arith.constant 0.000000e+00 : f32
    %4 = vector.broadcast %cst : f32 to vector<2x32xf32>
    %c0_3 = arith.constant 0 : index
    %c0_4 = arith.constant 0 : index
    %c0_5 = arith.constant 0 : index
    %5 = vector.load %arg0[%c0_3, %c0_4, %c0_5] : memref<3x16x32xf32, #tpu.memory_space<vmem>>, vector<1x2x32xf32>
    %6 = vector.shape_cast %5 : vector<1x2x32xf32> to vector<2x32xf32>
    %c1 = arith.constant 1 : index
    %c0_6 = arith.constant 0 : index
    %c0_7 = arith.constant 0 : index
    %7 = vector.load %arg0[%c1, %c0_6, %c0_7] : memref<3x16x32xf32, #tpu.memory_space<vmem>>, vector<1x2x32xf32>
    %8 = vector.shape_cast %7 : vector<1x2x32xf32> to vector<2x32xf32>
    %c2 = arith.constant 2 : index
    %c0_8 = arith.constant 0 : index
    %c0_9 = arith.constant 0 : index
    %9 = vector.load %arg0[%c2, %c0_8, %c0_9] : memref<3x16x32xf32, #tpu.memory_space<vmem>>, vector<1x2x32xf32>
    %10 = vector.shape_cast %9 : vector<1x2x32xf32> to vector<2x32xf32>
    %cst_10 = arith.constant dense<0.000000e+00> : vector<2x96xf32>
    %11 = tpu.matmul %4, %0, %cst_10 {dimension_numbers = #tpu.dot_dimension_numbers<[1], [0], [0], [1], [0, 0, 1, 1], [], []>} : vector<2x32xf32>, vector<32x96xf32>, vector<2x96xf32> -> vector<2x96xf32>
    %12 = vector.extract_strided_slice %11 {offsets = [0, 0], sizes = [2, 32], strides = [1, 1]} : vector<2x96xf32> to vector<2x32xf32>
    %13 = arith.addf %6, %12 : vector<2x32xf32>
    %14 = arith.negf %13 : vector<2x32xf32>
    %15 = math.exp %14 : vector<2x32xf32>
    %cst_11 = arith.constant 1.000000e+00 : f32
    %16 = vector.broadcast %cst_11 : f32 to vector<2x32xf32>
    %17 = arith.addf %16, %15 : vector<2x32xf32>
    %18 = arith.divf %16, %17 : vector<2x32xf32>
    %19 = vector.extract_strided_slice %11 {offsets = [0, 32], sizes = [2, 32], strides = [1, 1]} : vector<2x96xf32> to vector<2x32xf32>
    %20 = arith.addf %8, %19 : vector<2x32xf32>
    %21 = arith.negf %20 : vector<2x32xf32>
    %22 = math.exp %21 : vector<2x32xf32>
    %cst_12 = arith.constant 1.000000e+00 : f32
    %23 = vector.broadcast %cst_12 : f32 to vector<2x32xf32>
    %24 = arith.addf %23, %22 : vector<2x32xf32>
    %25 = arith.divf %23, %24 : vector<2x32xf32>
    %26 = vector.extract_strided_slice %11 {offsets = [0, 64], sizes = [2, 32], strides = [1, 1]} : vector<2x96xf32> to vector<2x32xf32>
    %27 = arith.addf %26, %3 : vector<2x32xf32>
    %28 = arith.mulf %18, %27 : vector<2x32xf32>
    %29 = arith.addf %10, %28 : vector<2x32xf32>
    %30 = math.tanh %29 : vector<2x32xf32>
    %31 = arith.subf %4, %30 : vector<2x32xf32>
    %32 = arith.mulf %25, %31 : vector<2x32xf32>
    %33 = arith.addf %30, %32 : vector<2x32xf32>
    %c0_13 = arith.constant 0 : index
    %c2_14 = arith.constant 2 : index
    %c0_15 = arith.constant 0 : index
    %34 = vector.load %arg0[%c0_13, %c2_14, %c0_15] : memref<3x16x32xf32, #tpu.memory_space<vmem>>, vector<1x2x32xf32>
    %35 = vector.shape_cast %34 : vector<1x2x32xf32> to vector<2x32xf32>
    %c1_16 = arith.constant 1 : index
    %c2_17 = arith.constant 2 : index
    %c0_18 = arith.constant 0 : index
    %36 = vector.load %arg0[%c1_16, %c2_17, %c0_18] : memref<3x16x32xf32, #tpu.memory_space<vmem>>, vector<1x2x32xf32>
    %37 = vector.shape_cast %36 : vector<1x2x32xf32> to vector<2x32xf32>
    %c2_19 = arith.constant 2 : index
    %c2_20 = arith.constant 2 : index
    %c0_21 = arith.constant 0 : index
    %38 = vector.load %arg0[%c2_19, %c2_20, %c0_21] : memref<3x16x32xf32, #tpu.memory_space<vmem>>, vector<1x2x32xf32>
    %39 = vector.shape_cast %38 : vector<1x2x32xf32> to vector<2x32xf32>
    %cst_22 = arith.constant dense<0.000000e+00> : vector<2x96xf32>
    %40 = tpu.matmul %33, %0, %cst_22 {dimension_numbers = #tpu.dot_dimension_numbers<[1], [0], [0], [1], [0, 0, 1, 1], [], []>} : vector<2x32xf32>, vector<32x96xf32>, vector<2x96xf32> -> vector<2x96xf32>
    %41 = vector.extract_strided_slice %40 {offsets = [0, 0], sizes = [2, 32], strides = [1, 1]} : vector<2x96xf32> to vector<2x32xf32>
    %42 = arith.addf %35, %41 : vector<2x32xf32>
    %43 = arith.negf %42 : vector<2x32xf32>
    %44 = math.exp %43 : vector<2x32xf32>
    %cst_23 = arith.constant 1.000000e+00 : f32
    %45 = vector.broadcast %cst_23 : f32 to vector<2x32xf32>
    %46 = arith.addf %45, %44 : vector<2x32xf32>
    %47 = arith.divf %45, %46 : vector<2x32xf32>
    %48 = vector.extract_strided_slice %40 {offsets = [0, 32], sizes = [2, 32], strides = [1, 1]} : vector<2x96xf32> to vector<2x32xf32>
    %49 = arith.addf %37, %48 : vector<2x32xf32>
    %50 = arith.negf %49 : vector<2x32xf32>
    %51 = math.exp %50 : vector<2x32xf32>
    %cst_24 = arith.constant 1.000000e+00 : f32
    %52 = vector.broadcast %cst_24 : f32 to vector<2x32xf32>
    %53 = arith.addf %52, %51 : vector<2x32xf32>
    %54 = arith.divf %52, %53 : vector<2x32xf32>
    %55 = vector.extract_strided_slice %40 {offsets = [0, 64], sizes = [2, 32], strides = [1, 1]} : vector<2x96xf32> to vector<2x32xf32>
    %56 = arith.addf %55, %3 : vector<2x32xf32>
    %57 = arith.mulf %47, %56 : vector<2x32xf32>
    %58 = arith.addf %39, %57 : vector<2x32xf32>
    %59 = math.tanh %58 : vector<2x32xf32>
    %60 = arith.subf %33, %59 : vector<2x32xf32>
    %61 = arith.mulf %54, %60 : vector<2x32xf32>
    %62 = arith.addf %59, %61 : vector<2x32xf32>
    %c0_25 = arith.constant 0 : index
    %c4 = arith.constant 4 : index
    %c0_26 = arith.constant 0 : index
    %63 = vector.load %arg0[%c0_25, %c4, %c0_26] : memref<3x16x32xf32, #tpu.memory_space<vmem>>, vector<1x2x32xf32>
    %64 = vector.shape_cast %63 : vector<1x2x32xf32> to vector<2x32xf32>
    %c1_27 = arith.constant 1 : index
    %c4_28 = arith.constant 4 : index
    %c0_29 = arith.constant 0 : index
    %65 = vector.load %arg0[%c1_27, %c4_28, %c0_29] : memref<3x16x32xf32, #tpu.memory_space<vmem>>, vector<1x2x32xf32>
    %66 = vector.shape_cast %65 : vector<1x2x32xf32> to vector<2x32xf32>
    %c2_30 = arith.constant 2 : index
    %c4_31 = arith.constant 4 : index
    %c0_32 = arith.constant 0 : index
    %67 = vector.load %arg0[%c2_30, %c4_31, %c0_32] : memref<3x16x32xf32, #tpu.memory_space<vmem>>, vector<1x2x32xf32>
    %68 = vector.shape_cast %67 : vector<1x2x32xf32> to vector<2x32xf32>
    %cst_33 = arith.constant dense<0.000000e+00> : vector<2x96xf32>
    %69 = tpu.matmul %62, %0, %cst_33 {dimension_numbers = #tpu.dot_dimension_numbers<[1], [0], [0], [1], [0, 0, 1, 1], [], []>} : vector<2x32xf32>, vector<32x96xf32>, vector<2x96xf32> -> vector<2x96xf32>
    %70 = vector.extract_strided_slice %69 {offsets = [0, 0], sizes = [2, 32], strides = [1, 1]} : vector<2x96xf32> to vector<2x32xf32>
    %71 = arith.addf %64, %70 : vector<2x32xf32>
    %72 = arith.negf %71 : vector<2x32xf32>
    %73 = math.exp %72 : vector<2x32xf32>
    %cst_34 = arith.constant 1.000000e+00 : f32
    %74 = vector.broadcast %cst_34 : f32 to vector<2x32xf32>
    %75 = arith.addf %74, %73 : vector<2x32xf32>
    %76 = arith.divf %74, %75 : vector<2x32xf32>
    %77 = vector.extract_strided_slice %69 {offsets = [0, 32], sizes = [2, 32], strides = [1, 1]} : vector<2x96xf32> to vector<2x32xf32>
    %78 = arith.addf %66, %77 : vector<2x32xf32>
    %79 = arith.negf %78 : vector<2x32xf32>
    %80 = math.exp %79 : vector<2x32xf32>
    %cst_35 = arith.constant 1.000000e+00 : f32
    %81 = vector.broadcast %cst_35 : f32 to vector<2x32xf32>
    %82 = arith.addf %81, %80 : vector<2x32xf32>
    %83 = arith.divf %81, %82 : vector<2x32xf32>
    %84 = vector.extract_strided_slice %69 {offsets = [0, 64], sizes = [2, 32], strides = [1, 1]} : vector<2x96xf32> to vector<2x32xf32>
    %85 = arith.addf %84, %3 : vector<2x32xf32>
    %86 = arith.mulf %76, %85 : vector<2x32xf32>
    %87 = arith.addf %68, %86 : vector<2x32xf32>
    %88 = math.tanh %87 : vector<2x32xf32>
    %89 = arith.subf %62, %88 : vector<2x32xf32>
    %90 = arith.mulf %83, %89 : vector<2x32xf32>
    %91 = arith.addf %88, %90 : vector<2x32xf32>
    %c0_36 = arith.constant 0 : index
    %c6 = arith.constant 6 : index
    %c0_37 = arith.constant 0 : index
    %92 = vector.load %arg0[%c0_36, %c6, %c0_37] : memref<3x16x32xf32, #tpu.memory_space<vmem>>, vector<1x2x32xf32>
    %93 = vector.shape_cast %92 : vector<1x2x32xf32> to vector<2x32xf32>
    %c1_38 = arith.constant 1 : index
    %c6_39 = arith.constant 6 : index
    %c0_40 = arith.constant 0 : index
    %94 = vector.load %arg0[%c1_38, %c6_39, %c0_40] : memref<3x16x32xf32, #tpu.memory_space<vmem>>, vector<1x2x32xf32>
    %95 = vector.shape_cast %94 : vector<1x2x32xf32> to vector<2x32xf32>
    %c2_41 = arith.constant 2 : index
    %c6_42 = arith.constant 6 : index
    %c0_43 = arith.constant 0 : index
    %96 = vector.load %arg0[%c2_41, %c6_42, %c0_43] : memref<3x16x32xf32, #tpu.memory_space<vmem>>, vector<1x2x32xf32>
    %97 = vector.shape_cast %96 : vector<1x2x32xf32> to vector<2x32xf32>
    %cst_44 = arith.constant dense<0.000000e+00> : vector<2x96xf32>
    %98 = tpu.matmul %91, %0, %cst_44 {dimension_numbers = #tpu.dot_dimension_numbers<[1], [0], [0], [1], [0, 0, 1, 1], [], []>} : vector<2x32xf32>, vector<32x96xf32>, vector<2x96xf32> -> vector<2x96xf32>
    %99 = vector.extract_strided_slice %98 {offsets = [0, 0], sizes = [2, 32], strides = [1, 1]} : vector<2x96xf32> to vector<2x32xf32>
    %100 = arith.addf %93, %99 : vector<2x32xf32>
    %101 = arith.negf %100 : vector<2x32xf32>
    %102 = math.exp %101 : vector<2x32xf32>
    %cst_45 = arith.constant 1.000000e+00 : f32
    %103 = vector.broadcast %cst_45 : f32 to vector<2x32xf32>
    %104 = arith.addf %103, %102 : vector<2x32xf32>
    %105 = arith.divf %103, %104 : vector<2x32xf32>
    %106 = vector.extract_strided_slice %98 {offsets = [0, 32], sizes = [2, 32], strides = [1, 1]} : vector<2x96xf32> to vector<2x32xf32>
    %107 = arith.addf %95, %106 : vector<2x32xf32>
    %108 = arith.negf %107 : vector<2x32xf32>
    %109 = math.exp %108 : vector<2x32xf32>
    %cst_46 = arith.constant 1.000000e+00 : f32
    %110 = vector.broadcast %cst_46 : f32 to vector<2x32xf32>
    %111 = arith.addf %110, %109 : vector<2x32xf32>
    %112 = arith.divf %110, %111 : vector<2x32xf32>
    %113 = vector.extract_strided_slice %98 {offsets = [0, 64], sizes = [2, 32], strides = [1, 1]} : vector<2x96xf32> to vector<2x32xf32>
    %114 = arith.addf %113, %3 : vector<2x32xf32>
    %115 = arith.mulf %105, %114 : vector<2x32xf32>
    %116 = arith.addf %97, %115 : vector<2x32xf32>
    %117 = math.tanh %116 : vector<2x32xf32>
    %118 = arith.subf %91, %117 : vector<2x32xf32>
    %119 = arith.mulf %112, %118 : vector<2x32xf32>
    %120 = arith.addf %117, %119 : vector<2x32xf32>
    %c0_47 = arith.constant 0 : index
    %c8 = arith.constant 8 : index
    %c0_48 = arith.constant 0 : index
    %121 = vector.load %arg0[%c0_47, %c8, %c0_48] : memref<3x16x32xf32, #tpu.memory_space<vmem>>, vector<1x2x32xf32>
    %122 = vector.shape_cast %121 : vector<1x2x32xf32> to vector<2x32xf32>
    %c1_49 = arith.constant 1 : index
    %c8_50 = arith.constant 8 : index
    %c0_51 = arith.constant 0 : index
    %123 = vector.load %arg0[%c1_49, %c8_50, %c0_51] : memref<3x16x32xf32, #tpu.memory_space<vmem>>, vector<1x2x32xf32>
    %124 = vector.shape_cast %123 : vector<1x2x32xf32> to vector<2x32xf32>
    %c2_52 = arith.constant 2 : index
    %c8_53 = arith.constant 8 : index
    %c0_54 = arith.constant 0 : index
    %125 = vector.load %arg0[%c2_52, %c8_53, %c0_54] : memref<3x16x32xf32, #tpu.memory_space<vmem>>, vector<1x2x32xf32>
    %126 = vector.shape_cast %125 : vector<1x2x32xf32> to vector<2x32xf32>
    %cst_55 = arith.constant dense<0.000000e+00> : vector<2x96xf32>
    %127 = tpu.matmul %120, %0, %cst_55 {dimension_numbers = #tpu.dot_dimension_numbers<[1], [0], [0], [1], [0, 0, 1, 1], [], []>} : vector<2x32xf32>, vector<32x96xf32>, vector<2x96xf32> -> vector<2x96xf32>
    %128 = vector.extract_strided_slice %127 {offsets = [0, 0], sizes = [2, 32], strides = [1, 1]} : vector<2x96xf32> to vector<2x32xf32>
    %129 = arith.addf %122, %128 : vector<2x32xf32>
    %130 = arith.negf %129 : vector<2x32xf32>
    %131 = math.exp %130 : vector<2x32xf32>
    %cst_56 = arith.constant 1.000000e+00 : f32
    %132 = vector.broadcast %cst_56 : f32 to vector<2x32xf32>
    %133 = arith.addf %132, %131 : vector<2x32xf32>
    %134 = arith.divf %132, %133 : vector<2x32xf32>
    %135 = vector.extract_strided_slice %127 {offsets = [0, 32], sizes = [2, 32], strides = [1, 1]} : vector<2x96xf32> to vector<2x32xf32>
    %136 = arith.addf %124, %135 : vector<2x32xf32>
    %137 = arith.negf %136 : vector<2x32xf32>
    %138 = math.exp %137 : vector<2x32xf32>
    %cst_57 = arith.constant 1.000000e+00 : f32
    %139 = vector.broadcast %cst_57 : f32 to vector<2x32xf32>
    %140 = arith.addf %139, %138 : vector<2x32xf32>
    %141 = arith.divf %139, %140 : vector<2x32xf32>
    %142 = vector.extract_strided_slice %127 {offsets = [0, 64], sizes = [2, 32], strides = [1, 1]} : vector<2x96xf32> to vector<2x32xf32>
    %143 = arith.addf %142, %3 : vector<2x32xf32>
    %144 = arith.mulf %134, %143 : vector<2x32xf32>
    %145 = arith.addf %126, %144 : vector<2x32xf32>
    %146 = math.tanh %145 : vector<2x32xf32>
    %147 = arith.subf %120, %146 : vector<2x32xf32>
    %148 = arith.mulf %141, %147 : vector<2x32xf32>
    %149 = arith.addf %146, %148 : vector<2x32xf32>
    %c0_58 = arith.constant 0 : index
    %c10 = arith.constant 10 : index
    %c0_59 = arith.constant 0 : index
    %150 = vector.load %arg0[%c0_58, %c10, %c0_59] : memref<3x16x32xf32, #tpu.memory_space<vmem>>, vector<1x2x32xf32>
    %151 = vector.shape_cast %150 : vector<1x2x32xf32> to vector<2x32xf32>
    %c1_60 = arith.constant 1 : index
    %c10_61 = arith.constant 10 : index
    %c0_62 = arith.constant 0 : index
    %152 = vector.load %arg0[%c1_60, %c10_61, %c0_62] : memref<3x16x32xf32, #tpu.memory_space<vmem>>, vector<1x2x32xf32>
    %153 = vector.shape_cast %152 : vector<1x2x32xf32> to vector<2x32xf32>
    %c2_63 = arith.constant 2 : index
    %c10_64 = arith.constant 10 : index
    %c0_65 = arith.constant 0 : index
    %154 = vector.load %arg0[%c2_63, %c10_64, %c0_65] : memref<3x16x32xf32, #tpu.memory_space<vmem>>, vector<1x2x32xf32>
    %155 = vector.shape_cast %154 : vector<1x2x32xf32> to vector<2x32xf32>
    %cst_66 = arith.constant dense<0.000000e+00> : vector<2x96xf32>
    %156 = tpu.matmul %149, %0, %cst_66 {dimension_numbers = #tpu.dot_dimension_numbers<[1], [0], [0], [1], [0, 0, 1, 1], [], []>} : vector<2x32xf32>, vector<32x96xf32>, vector<2x96xf32> -> vector<2x96xf32>
    %157 = vector.extract_strided_slice %156 {offsets = [0, 0], sizes = [2, 32], strides = [1, 1]} : vector<2x96xf32> to vector<2x32xf32>
    %158 = arith.addf %151, %157 : vector<2x32xf32>
    %159 = arith.negf %158 : vector<2x32xf32>
    %160 = math.exp %159 : vector<2x32xf32>
    %cst_67 = arith.constant 1.000000e+00 : f32
    %161 = vector.broadcast %cst_67 : f32 to vector<2x32xf32>
    %162 = arith.addf %161, %160 : vector<2x32xf32>
    %163 = arith.divf %161, %162 : vector<2x32xf32>
    %164 = vector.extract_strided_slice %156 {offsets = [0, 32], sizes = [2, 32], strides = [1, 1]} : vector<2x96xf32> to vector<2x32xf32>
    %165 = arith.addf %153, %164 : vector<2x32xf32>
    %166 = arith.negf %165 : vector<2x32xf32>
    %167 = math.exp %166 : vector<2x32xf32>
    %cst_68 = arith.constant 1.000000e+00 : f32
    %168 = vector.broadcast %cst_68 : f32 to vector<2x32xf32>
    %169 = arith.addf %168, %167 : vector<2x32xf32>
    %170 = arith.divf %168, %169 : vector<2x32xf32>
    %171 = vector.extract_strided_slice %156 {offsets = [0, 64], sizes = [2, 32], strides = [1, 1]} : vector<2x96xf32> to vector<2x32xf32>
    %172 = arith.addf %171, %3 : vector<2x32xf32>
    %173 = arith.mulf %163, %172 : vector<2x32xf32>
    %174 = arith.addf %155, %173 : vector<2x32xf32>
    %175 = math.tanh %174 : vector<2x32xf32>
    %176 = arith.subf %149, %175 : vector<2x32xf32>
    %177 = arith.mulf %170, %176 : vector<2x32xf32>
    %178 = arith.addf %175, %177 : vector<2x32xf32>
    %c0_69 = arith.constant 0 : index
    %c12 = arith.constant 12 : index
    %c0_70 = arith.constant 0 : index
    %179 = vector.load %arg0[%c0_69, %c12, %c0_70] : memref<3x16x32xf32, #tpu.memory_space<vmem>>, vector<1x2x32xf32>
    %180 = vector.shape_cast %179 : vector<1x2x32xf32> to vector<2x32xf32>
    %c1_71 = arith.constant 1 : index
    %c12_72 = arith.constant 12 : index
    %c0_73 = arith.constant 0 : index
    %181 = vector.load %arg0[%c1_71, %c12_72, %c0_73] : memref<3x16x32xf32, #tpu.memory_space<vmem>>, vector<1x2x32xf32>
    %182 = vector.shape_cast %181 : vector<1x2x32xf32> to vector<2x32xf32>
    %c2_74 = arith.constant 2 : index
    %c12_75 = arith.constant 12 : index
    %c0_76 = arith.constant 0 : index
    %183 = vector.load %arg0[%c2_74, %c12_75, %c0_76] : memref<3x16x32xf32, #tpu.memory_space<vmem>>, vector<1x2x32xf32>
    %184 = vector.shape_cast %183 : vector<1x2x32xf32> to vector<2x32xf32>
    %cst_77 = arith.constant dense<0.000000e+00> : vector<2x96xf32>
    %185 = tpu.matmul %178, %0, %cst_77 {dimension_numbers = #tpu.dot_dimension_numbers<[1], [0], [0], [1], [0, 0, 1, 1], [], []>} : vector<2x32xf32>, vector<32x96xf32>, vector<2x96xf32> -> vector<2x96xf32>
    %186 = vector.extract_strided_slice %185 {offsets = [0, 0], sizes = [2, 32], strides = [1, 1]} : vector<2x96xf32> to vector<2x32xf32>
    %187 = arith.addf %180, %186 : vector<2x32xf32>
    %188 = arith.negf %187 : vector<2x32xf32>
    %189 = math.exp %188 : vector<2x32xf32>
    %cst_78 = arith.constant 1.000000e+00 : f32
    %190 = vector.broadcast %cst_78 : f32 to vector<2x32xf32>
    %191 = arith.addf %190, %189 : vector<2x32xf32>
    %192 = arith.divf %190, %191 : vector<2x32xf32>
    %193 = vector.extract_strided_slice %185 {offsets = [0, 32], sizes = [2, 32], strides = [1, 1]} : vector<2x96xf32> to vector<2x32xf32>
    %194 = arith.addf %182, %193 : vector<2x32xf32>
    %195 = arith.negf %194 : vector<2x32xf32>
    %196 = math.exp %195 : vector<2x32xf32>
    %cst_79 = arith.constant 1.000000e+00 : f32
    %197 = vector.broadcast %cst_79 : f32 to vector<2x32xf32>
    %198 = arith.addf %197, %196 : vector<2x32xf32>
    %199 = arith.divf %197, %198 : vector<2x32xf32>
    %200 = vector.extract_strided_slice %185 {offsets = [0, 64], sizes = [2, 32], strides = [1, 1]} : vector<2x96xf32> to vector<2x32xf32>
    %201 = arith.addf %200, %3 : vector<2x32xf32>
    %202 = arith.mulf %192, %201 : vector<2x32xf32>
    %203 = arith.addf %184, %202 : vector<2x32xf32>
    %204 = math.tanh %203 : vector<2x32xf32>
    %205 = arith.subf %178, %204 : vector<2x32xf32>
    %206 = arith.mulf %199, %205 : vector<2x32xf32>
    %207 = arith.addf %204, %206 : vector<2x32xf32>
    %c0_80 = arith.constant 0 : index
    %c14 = arith.constant 14 : index
    %c0_81 = arith.constant 0 : index
    %208 = vector.load %arg0[%c0_80, %c14, %c0_81] : memref<3x16x32xf32, #tpu.memory_space<vmem>>, vector<1x2x32xf32>
    %209 = vector.shape_cast %208 : vector<1x2x32xf32> to vector<2x32xf32>
    %c1_82 = arith.constant 1 : index
    %c14_83 = arith.constant 14 : index
    %c0_84 = arith.constant 0 : index
    %210 = vector.load %arg0[%c1_82, %c14_83, %c0_84] : memref<3x16x32xf32, #tpu.memory_space<vmem>>, vector<1x2x32xf32>
    %211 = vector.shape_cast %210 : vector<1x2x32xf32> to vector<2x32xf32>
    %c2_85 = arith.constant 2 : index
    %c14_86 = arith.constant 14 : index
    %c0_87 = arith.constant 0 : index
    %212 = vector.load %arg0[%c2_85, %c14_86, %c0_87] : memref<3x16x32xf32, #tpu.memory_space<vmem>>, vector<1x2x32xf32>
    %213 = vector.shape_cast %212 : vector<1x2x32xf32> to vector<2x32xf32>
    %cst_88 = arith.constant dense<0.000000e+00> : vector<2x96xf32>
    %214 = tpu.matmul %207, %0, %cst_88 {dimension_numbers = #tpu.dot_dimension_numbers<[1], [0], [0], [1], [0, 0, 1, 1], [], []>} : vector<2x32xf32>, vector<32x96xf32>, vector<2x96xf32> -> vector<2x96xf32>
    %215 = vector.extract_strided_slice %214 {offsets = [0, 0], sizes = [2, 32], strides = [1, 1]} : vector<2x96xf32> to vector<2x32xf32>
    %216 = arith.addf %209, %215 : vector<2x32xf32>
    %217 = arith.negf %216 : vector<2x32xf32>
    %218 = math.exp %217 : vector<2x32xf32>
    %cst_89 = arith.constant 1.000000e+00 : f32
    %219 = vector.broadcast %cst_89 : f32 to vector<2x32xf32>
    %220 = arith.addf %219, %218 : vector<2x32xf32>
    %221 = arith.divf %219, %220 : vector<2x32xf32>
    %222 = vector.extract_strided_slice %214 {offsets = [0, 32], sizes = [2, 32], strides = [1, 1]} : vector<2x96xf32> to vector<2x32xf32>
    %223 = arith.addf %211, %222 : vector<2x32xf32>
    %224 = arith.negf %223 : vector<2x32xf32>
    %225 = math.exp %224 : vector<2x32xf32>
    %cst_90 = arith.constant 1.000000e+00 : f32
    %226 = vector.broadcast %cst_90 : f32 to vector<2x32xf32>
    %227 = arith.addf %226, %225 : vector<2x32xf32>
    %228 = arith.divf %226, %227 : vector<2x32xf32>
    %229 = vector.extract_strided_slice %214 {offsets = [0, 64], sizes = [2, 32], strides = [1, 1]} : vector<2x96xf32> to vector<2x32xf32>
    %230 = arith.addf %229, %3 : vector<2x32xf32>
    %231 = arith.mulf %221, %230 : vector<2x32xf32>
    %232 = arith.addf %213, %231 : vector<2x32xf32>
    %233 = math.tanh %232 : vector<2x32xf32>
    %234 = arith.subf %207, %233 : vector<2x32xf32>
    %235 = arith.mulf %228, %234 : vector<2x32xf32>
    %236 = arith.addf %233, %235 : vector<2x32xf32>
    %237 = tpu.concatenate %33, %62, %91, %120, %149, %178, %207, %236 in 1 : vector<2x32xf32>, vector<2x32xf32>, vector<2x32xf32>, vector<2x32xf32>, vector<2x32xf32>, vector<2x32xf32>, vector<2x32xf32>, vector<2x32xf32> -> vector<2x256xf32>
    %c0_91 = arith.constant 0 : index
    %c0_92 = arith.constant 0 : index
    %238 = vector.load %arg3[%c0_91, %c0_92] : memref<2x256xf32, #tpu.memory_space<vmem>>, vector<2x256xf32>
    tpu.vector_store %arg3[%c0_91, %c0_92], %237 {strides = array<i32>} : memref<2x256xf32, #tpu.memory_space<vmem>>, vector<2x256xf32>,
    return
  }
}

</mosaic_0001>

<bundles_post_ra>
// kernel: encoder_rnn_forward.1
= control target key start
LH: loop header
LB: loop body
LE: loop exit
PB: predicated region body
PF: predicated region fallthrough
CT: control target
= control target key end

     0   :  { %v1216_v0 = vmov 0.0|0.0   ;;  %vm1217_vm0 = vmmov 0   ;;  %v1218_v4 = vmov 0.0   ;;  %s1219_s22 = smov 64   ;;  %vm29_vm1 = vcmask 261120   ;;  %s1221_s10 = smov 32   ;;  %s1450_s1 = inlined_call_operand.vmem [shape: f32[32,96], index: 1, kind: input, shape index: {}]   ;;  %s1451_s2 = inlined_call_operand.vmem [shape: f32[1,32], index: 2, kind: input, shape index: {}]   ;;  %s1452_s0 = inlined_call_operand.vmem [shape: f32[3,16,32], index: 0, kind: input, shape index: {}]   ;;  %s1453_s3 = inlined_call_operand.vmem [shape: f32[2,256], index: 3, kind: output, shape index: {}]  }
   0x1   :  { %1082 = vmatprep.subr.bf16.mxu0 %v1216_v0  ;;  %v14_v1 = vld [vmem:[%s1450_s1] sm:$0xff]  ;;  %v15_v2 = vld [vmem:[%s1450_s1 + $0x8] sm:$0xff]  ;;  %v16_v3 = vld [vmem:[%s1450_s1 + $0x10] sm:$0xff]  ;;  %1002 = vmatprep.mubr.msk.f32.mxu0 %vm1217_vm0, %v1218_v4  ;;  %vm890_vm2 = vcmask 523264   ;;  %vm892_vm3 = vcmask 785408  }
   0x2   :  { %v1254_v5 = vpack.c.bf16 %v15_v2, %v14_v1  ;;  %v17_v6 = vld [vmem:[%s1450_s1 + $0x18] sm:$0xff]  ;;  %v913_v7 = vld [vmem:[%s1451_s2] ss:$0 sm:$0xff]  ;;  %1088 = vmatprep.subr.bf16.mxu1 %v1216_v0  ;;  %1013 = vmatprep.mubr.msk.f32.mxu1 %vm1217_vm0, %v1218_v4  ;;  %s1220_s1 = smov 96   ;;  %v914_v18 = vld [vmem:[%s1452_s0 + $0x10] sm:$0x3] }
   0x3   :  { %121 = vrot.lane.b32.xlu0 %v913_v7, %s1219_s22  ;;  %v1267_v8 = vpack.c.bf16 %v17_v6, %v16_v3  ;;  %v24_v13 = vld [vmem:[%s1452_s0] sm:$0x3]  ;;  %v135_v37 = vld [vmem:[%s1452_s0 + $0x2] sm:$0x3]  ;;  %v918_v42 = vld [vmem:[%s1452_s0 + $0x12] sm:$0x3] }
   0x4   :  { %1084 = vmatpush3.bf16.msra.mxu0 %v1254_v5  ;;  %1090 = vmatpush3.bf16.msra.mxu1 %v1254_v5  ;;  %v915_v25 = vld [vmem:[%s1452_s0 + $0x20] sm:$0x3]  ;;  %v919_v49 = vld [vmem:[%s1452_s0 + $0x22] sm:$0x3]  ;;  %v240_v61 = vld [vmem:[%s1452_s0 + $0x4] sm:$0x3] }
   0x5   :  { %1085 = vmatprep.subr.bf16.mxu0 %v1216_v0  ;;  %1091 = vmatprep.subr.bf16.mxu1 %v1216_v0  ;;  %v923_v3 = vld [vmem:[%s1452_s0 + $0x14] sm:$0x3] }
   0x8   :  { %1087 = vmatpush3.bf16.msra.mxu0 %v1267_v8  ;;  %1093 = vmatpush3.bf16.msra.mxu1 %v1267_v8 }
   0x9   :  { %1094 = vmatprep.subr.bf16.mxu0 %v1216_v0  ;;  %1100 = vmatprep.subr.bf16.mxu1 %v1216_v0 }
   0xb   :  { %1003 = vmatmul.mubr.f32.vlgmr.msra.gmra.mrb[0].mxu0 %v1218_v4 }
   0xc   :  { %1096 = vmatpush3.bf16.msra.mxu0 %v1254_v5  ;;  %1024 = vmatprep.mubr.msk.f32.mxu0 %vm1217_vm0, %v1218_v4 }
   0xd   :  { %1097 = vmatprep.subr.bf16.mxu0 %v1216_v0 }
  0x10   :  { %1099 = vmatpush3.bf16.msra.mxu0 %v1267_v8 }
  0x11   :  { %1106 = vmatprep.subr.bf16.mxu0 %v1216_v0 }
  0x75   :  { %v1283_v9 = vpop.permute.xlu0 %121 }
  0xde   :  { %v99_v10 = vpop.f32.mrb[0].mxu0 }
  0xdf   :  { %111 = vrot.lane.b32.xlu0 %v99_v10, %s1220_s1  ;;  %v1004_v11 = vpop.f32.mrb[1].mxu0  ;;  %v124_v12 = vadd.f32 %v1283_v9, %v99_v10  ;;  %v103_v14 = vadd.f32 %v99_v10, %v24_v13 }
  0xe1   :  { %126 = vrot.lane.b32.xlu1 %v124_v12, %s1219_s22  ;;  %v916_v15 = vmul.f32 -1.442695, %v103_v14  ;;  %v924_v14 = vld [vmem:[%s1452_s0 + $0x24] sm:$0x3] }
  0xe3   :  { %1136 = vpow2.f32 %v916_v15 }
  0xed   :  { %v1137_v16 = vpop.eup %1136 }
  0xee   :  { %v107_v17 = vadd.f32 1.0, %v1137_v16 }
  0xf0   :  { %1138 = vrcp.f32 %v107_v17 }
  0xfa   :  { %v1139_v23 = vpop.eup %1138 }
 0x151   :  { %v112_v19 = vpop.permute.xlu0 %111 }
 0x152   :  { %v114_v20 = vadd.f32 %v914_v18, %v112_v19 }
 0x153   :  { %v127_v22 = vpop.permute.xlu1 %126 }
 0x154   :  { %v917_v21 = vmul.f32 -1.442695, %v114_v20  ;;  %v129_v24 = vmul.f32 %v1139_v23, %v127_v22 }
 0x156   :  { %1140 = vpow2.f32 %v917_v21  ;;  %v130_v26 = vadd.f32 %v915_v25, %v129_v24 }
 0x158   :  { %1142 = vtanh.f32 %v130_v26  ;;  %v345_v26 = vld [vmem:[%s1452_s0 + $0x6] sm:$0x3] }
 0x160   :  { %v1141_v27 = vpop.eup %1140 }
 0x161   :  { %v118_v28 = vadd.f32 1.0, %v1141_v27 }
 0x162   :  { %v1143_v29 = vpop.eup %1142 }
 0x163   :  { %1144 = vrcp.f32 %v118_v28  ;;  %v132_v30 = vsub.f32 0.0, %v1143_v29 }
 0x16d   :  { %v1145_v31 = vpop.eup %1144 }
 0x16e   :  { %v133_v32 = vmul.f32 %v1145_v31, %v132_v30  ;;  %v928_v31 = vld [vmem:[%s1452_s0 + $0x16] sm:$0x3] }
 0x170   :  { %v1297_v33 = vadd.f32 %v1143_v29, %v133_v32 }
 0x172   :  { %1014 = vmatmul.mubr.msk.f32.vlgmr.msra.gmra.mrb[0].mxu1 %vm29_vm1, %v1297_v33 }
 0x173   :  { %1102 = vmatpush3.bf16.msra.mxu1 %v1254_v5  ;;  %1035 = vmatprep.mubr.msk.f32.mxu1 %vm1217_vm0, %v1218_v4 }
 0x174   :  { %1103 = vmatprep.subr.bf16.mxu1 %v1216_v0 }
 0x177   :  { %1105 = vmatpush3.bf16.msra.mxu1 %v1267_v8 }
 0x178   :  { %1112 = vmatprep.subr.bf16.mxu1 %v1216_v0 }
 0x245   :  { %v207_v34 = vpop.f32.mrb[0].mxu1 }
 0x246   :  { %v229_v35 = vadd.f32 %v207_v34, %v1283_v9  ;;  %219 = vrot.lane.b32.xlu1 %v207_v34, %s1220_s1  ;;  %v1015_v36 = vpop.f32.mrb[1].mxu1  ;;  %v211_v38 = vadd.f32 %v207_v34, %v135_v37 }
 0x248   :  { %231 = vrot.lane.b32.xlu0 %v229_v35, %s1219_s22  ;;  %v921_v39 = vmul.f32 -1.442695, %v211_v38 }
 0x24a   :  { %1146 = vpow2.f32 %v921_v39  ;;  %v929_v39 = vld [vmem:[%s1452_s0 + $0x26] sm:$0x3] }
 0x254   :  { %v1147_v40 = vpop.eup %1146 }
 0x255   :  { %v215_v41 = vadd.f32 1.0, %v1147_v40 }
 0x257   :  { %1148 = vrcp.f32 %v215_v41 }
 0x261   :  { %v1149_v47 = vpop.eup %1148 }
 0x2b8   :  { %v220_v43 = vpop.permute.xlu1 %219 }
 0x2b9   :  { %v222_v44 = vadd.f32 %v918_v42, %v220_v43 }
 0x2ba   :  { %v232_v46 = vpop.permute.xlu0 %231 }
 0x2bb   :  { %v922_v45 = vmul.f32 -1.442695, %v222_v44  ;;  %v234_v48 = vmul.f32 %v1149_v47, %v232_v46 }
 0x2bd   :  { %1150 = vpow2.f32 %v922_v45  ;;  %v235_v50 = vadd.f32 %v919_v49, %v234_v48 }
 0x2bf   :  { %1152 = vtanh.f32 %v235_v50 }
 0x2c7   :  { %v1151_v51 = vpop.eup %1150 }
 0x2c8   :  { %v226_v52 = vadd.f32 1.0, %v1151_v51  ;;  %v450_v51 = vld [vmem:[%s1452_s0 + $0x8] sm:$0x3] }
 0x2c9   :  { %v1153_v53 = vpop.eup %1152 }
 0x2ca   :  { %1154 = vrcp.f32 %v226_v52  ;;  %v237_v54 = vsub.f32 %v1297_v33, %v1153_v53 }
 0x2d4   :  { %v1155_v55 = vpop.eup %1154 }
 0x2d5   :  { %v238_v56 = vmul.f32 %v1155_v55, %v237_v54 }
 0x2d7   :  { %v1320_v57 = vadd.f32 %v1153_v53, %v238_v56  ;;  %v933_v56 = vld [vmem:[%s1452_s0 + $0x18] sm:$0x3] }
 0x2d9   :  { %1025 = vmatmul.mubr.msk.f32.vlgmr.msra.gmra.mrb[2].mxu0 %vm29_vm1, %v1320_v57 }
 0x2da   :  { %1108 = vmatpush3.bf16.msra.mxu0 %v1254_v5  ;;  %1046 = vmatprep.mubr.msk.f32.mxu0 %vm1217_vm0, %v1218_v4 }
 0x2db   :  { %1109 = vmatprep.subr.bf16.mxu0 %v1216_v0 }
 0x2de   :  { %1111 = vmatpush3.bf16.msra.mxu0 %v1267_v8 }
 0x2df   :  { %1118 = vmatprep.subr.bf16.mxu0 %v1216_v0 }
 0x3ac   :  { %v312_v58 = vpop.f32.mrb[2].mxu0 }
 0x3ad   :  { %v334_v59 = vadd.f32 %v312_v58, %v1283_v9  ;;  %324 = vrot.lane.b32.xlu1 %v312_v58, %s1220_s1  ;;  %v1026_v60 = vpop.f32.mrb[3].mxu0  ;;  %v316_v62 = vadd.f32 %v312_v58, %v240_v61 }
 0x3af   :  { %336 = vrot.lane.b32.xlu0 %v334_v59, %s1219_s22  ;;  %v926_v63 = vmul.f32 -1.442695, %v316_v62 }
 0x3b1   :  { %1156 = vpow2.f32 %v926_v63 }
 0x3bb   :  { %v1157_v1 = vpop.eup %1156 }
 0x3bc   :  { %v320_v2 = vadd.f32 1.0, %v1157_v1  ;;  %v934_v1 = vld [vmem:[%s1452_s0 + $0x28] sm:$0x3] }
 0x3be   :  { %1158 = vrcp.f32 %v320_v2 }
 0x3c8   :  { %v1159_v12 = vpop.eup %1158 }
 0x41f   :  { %v325_v6 = vpop.permute.xlu1 %324 }
 0x420   :  { %v327_v7 = vadd.f32 %v923_v3, %v325_v6 }
 0x421   :  { %v337_v11 = vpop.permute.xlu0 %336 }
 0x422   :  { %v927_v10 = vmul.f32 -1.442695, %v327_v7  ;;  %v339_v13 = vmul.f32 %v1159_v12, %v337_v11 }
 0x424   :  { %1160 = vpow2.f32 %v927_v10  ;;  %v340_v15 = vadd.f32 %v924_v14, %v339_v13 }
 0x426   :  { %1162 = vtanh.f32 %v340_v15 }
 0x42e   :  { %v1161_v16 = vpop.eup %1160 }
 0x42f   :  { %v331_v17 = vadd.f32 1.0, %v1161_v16 }
 0x430   :  { %v1163_v18 = vpop.eup %1162 }
 0x431   :  { %1164 = vrcp.f32 %v331_v17  ;;  %v342_v19 = vsub.f32 %v1320_v57, %v1163_v18  ;;  %v555_v17 = vld [vmem:[%s1452_s0 + $0xa] sm:$0x3] }
 0x43b   :  { %v1165_v20 = vpop.eup %1164 }
 0x43c   :  { %v343_v21 = vmul.f32 %v1165_v20, %v342_v19 }
 0x43e   :  { %v1343_v22 = vadd.f32 %v1163_v18, %v343_v21 }
 0x440   :  { %1036 = vmatmul.mubr.msk.f32.vlgmr.msra.gmra.mrb[2].mxu1 %vm29_vm1, %v1343_v22 }
 0x441   :  { %1114 = vmatpush3.bf16.msra.mxu1 %v1254_v5  ;;  %1057 = vmatprep.mubr.msk.f32.mxu1 %vm1217_vm0, %v1218_v4 }
 0x442   :  { %1115 = vmatprep.subr.bf16.mxu1 %v1216_v0 }
 0x445   :  { %1117 = vmatpush3.bf16.msra.mxu1 %v1267_v8 }
 0x446   :  { %1124 = vmatprep.subr.bf16.mxu1 %v1216_v0 }
 0x513   :  { %v417_v23 = vpop.f32.mrb[2].mxu1 }
 0x514   :  { %v439_v24 = vadd.f32 %v417_v23, %v1283_v9  ;;  %429 = vrot.lane.b32.xlu1 %v417_v23, %s1220_s1  ;;  %v1037_v25 = vpop.f32.mrb[3].mxu1  ;;  %v421_v27 = vadd.f32 %v417_v23, %v345_v26  ;;  %v939_v26 = vld [vmem:[%s1452_s0 + $0x2a] sm:$0x3] }
 0x516   :  { %441 = vrot.lane.b32.xlu0 %v439_v24, %s1219_s22  ;;  %v931_v28 = vmul.f32 -1.442695, %v421_v27 }
 0x518   :  { %1166 = vpow2.f32 %v931_v28 }
 0x522   :  { %v1167_v29 = vpop.eup %1166 }
 0x523   :  { %v425_v30 = vadd.f32 1.0, %v1167_v29 }
 0x525   :  { %1168 = vrcp.f32 %v425_v30 }
 0x52f   :  { %v1169_v37 = vpop.eup %1168 }
 0x586   :  { %v430_v32 = vpop.permute.xlu1 %429 }
 0x587   :  { %v432_v34 = vadd.f32 %v928_v31, %v430_v32 }
 0x588   :  { %v442_v36 = vpop.permute.xlu0 %441 }
 0x589   :  { %v932_v35 = vmul.f32 -1.442695, %v432_v34  ;;  %v444_v38 = vmul.f32 %v1169_v37, %v442_v36 }
 0x58b   :  { %1170 = vpow2.f32 %v932_v35  ;;  %v445_v40 = vadd.f32 %v929_v39, %v444_v38  ;;  %v660_v39 = vld [vmem:[%s1452_s0 + $0xc] sm:$0x3] }
 0x58d   :  { %1172 = vtanh.f32 %v445_v40 }
 0x595   :  { %v1171_v41 = vpop.eup %1170 }
 0x596   :  { %v436_v42 = vadd.f32 1.0, %v1171_v41 }
 0x597   :  { %v1173_v43 = vpop.eup %1172 }
 0x598   :  { %1174 = vrcp.f32 %v436_v42  ;;  %v447_v44 = vsub.f32 %v1343_v22, %v1173_v43 }
 0x5a2   :  { %v1175_v45 = vpop.eup %1174 }
 0x5a3   :  { %v448_v46 = vmul.f32 %v1175_v45, %v447_v44  ;;  %v943_v44 = vld [vmem:[%s1452_s0 + $0x1c] sm:$0x3] }
 0x5a5   :  { %v1366_v47 = vadd.f32 %v1173_v43, %v448_v46 }
 0x5a7   :  { %1047 = vmatmul.mubr.msk.f32.vlgmr.msra.gmra.mrb[4].mxu0 %vm29_vm1, %v1366_v47 }
 0x5a8   :  { %1120 = vmatpush3.bf16.msra.mxu0 %v1254_v5  ;;  %1068 = vmatprep.mubr.msk.f32.mxu0 %vm1217_vm0, %v1218_v4 }
 0x5a9   :  { %1121 = vmatprep.subr.bf16.mxu0 %v1216_v0 }
 0x5ac   :  { %1123 = vmatpush3.bf16.msra.mxu0 %v1267_v8 }
 0x67a   :  { %v522_v48 = vpop.f32.mrb[4].mxu0 }
 0x67b   :  { %v544_v49 = vadd.f32 %v522_v48, %v1283_v9  ;;  %534 = vrot.lane.b32.xlu1 %v522_v48, %s1220_s1  ;;  %v1048_v50 = vpop.f32.mrb[5].mxu0  ;;  %v526_v52 = vadd.f32 %v522_v48, %v450_v51 }
 0x67d   :  { %546 = vrot.lane.b32.xlu0 %v544_v49, %s1219_s22  ;;  %v936_v53 = vmul.f32 -1.442695, %v526_v52  ;;  %v944_v52 = vld [vmem:[%s1452_s0 + $0x2c] sm:$0x3] }
 0x67f   :  { %1176 = vpow2.f32 %v936_v53 }
 0x689   :  { %v1177_v54 = vpop.eup %1176 }
 0x68a   :  { %v530_v55 = vadd.f32 1.0, %v1177_v54 }
 0x68c   :  { %1178 = vrcp.f32 %v530_v55 }
 0x696   :  { %v1179_v62 = vpop.eup %1178 }
 0x6ed   :  { %v535_v58 = vpop.permute.xlu1 %534 }
 0x6ee   :  { %v537_v59 = vadd.f32 %v933_v56, %v535_v58 }
 0x6ef   :  { %v547_v61 = vpop.permute.xlu0 %546 }
 0x6f0   :  { %v937_v60 = vmul.f32 -1.442695, %v537_v59  ;;  %v549_v63 = vmul.f32 %v1179_v62, %v547_v61 }
 0x6f2   :  { %1180 = vpow2.f32 %v937_v60  ;;  %v550_v2 = vadd.f32 %v934_v1, %v549_v63 }
 0x6f4   :  { %1182 = vtanh.f32 %v550_v2 }
 0x6fc   :  { %v1181_v3 = vpop.eup %1180 }
 0x6fd   :  { %v541_v6 = vadd.f32 1.0, %v1181_v3 }
 0x6fe   :  { %v1183_v7 = vpop.eup %1182 }
 0x6ff   :  { %1184 = vrcp.f32 %v541_v6  ;;  %v552_v10 = vsub.f32 %v1366_v47, %v1183_v7 }
 0x709   :  { %v1185_v11 = vpop.eup %1184 }
 0x70a   :  { %v553_v12 = vmul.f32 %v1185_v11, %v552_v10 }
 0x70c   :  { %v1388_v13 = vadd.f32 %v1183_v7, %v553_v12 }
 0x70e   :  { %1058 = vmatmul.mubr.msk.f32.vlgmr.msra.gmra.mrb[4].mxu1 %vm29_vm1, %v1388_v13 }
 0x70f   :  { %1126 = vmatpush3.bf16.msra.mxu1 %v1254_v5  ;;  %1079 = vmatprep.mubr.msk.f32.mxu1 %vm1217_vm0, %v1218_v4 }
 0x710   :  { %1127 = vmatprep.subr.bf16.mxu1 %v1216_v0  ;;  %v938_v0 = vld [vmem:[%s1452_s0 + $0x1a] sm:$0x3] }
 0x713   :  { %1129 = vmatpush3.bf16.msra.mxu1 %v1267_v8 }
 0x7e1   :  { %v627_v14 = vpop.f32.mrb[4].mxu1 }
 0x7e2   :  { %v649_v15 = vadd.f32 %v627_v14, %v1283_v9  ;;  %639 = vrot.lane.b32.xlu1 %v627_v14, %s1220_s1  ;;  %v1059_v16 = vpop.f32.mrb[5].mxu1  ;;  %v631_v5 = vadd.f32 %v627_v14, %v555_v17 }
 0x7e4   :  { %651 = vrot.lane.b32.xlu0 %v649_v15, %s1219_s22  ;;  %v941_v18 = vmul.f32 -1.442695, %v631_v5  ;;  %v949_v15 = vld [vmem:[%s1452_s0 + $0x2e] sm:$0x3] }
 0x7e6   :  { %1186 = vpow2.f32 %v941_v18 }
 0x7f0   :  { %v1187_v4 = vpop.eup %1186 }
 0x7f1   :  { %v635_v19 = vadd.f32 1.0, %v1187_v4 }
 0x7f3   :  { %1188 = vrcp.f32 %v635_v19 }
 0x7fd   :  { %v1189_v24 = vpop.eup %1188 }
 0x854   :  { %v640_v8 = vpop.permute.xlu1 %639 }
 0x855   :  { %v642_v20 = vadd.f32 %v938_v0, %v640_v8 }
 0x856   :  { %v652_v23 = vpop.permute.xlu0 %651 }
 0x857   :  { %v942_v21 = vmul.f32 -1.442695, %v642_v20  ;;  %v654_v25 = vmul.f32 %v1189_v24, %v652_v23 }
 0x859   :  { %1190 = vpow2.f32 %v942_v21  ;;  %v655_v27 = vadd.f32 %v939_v26, %v654_v25 }
 0x85b   :  { %1192 = vtanh.f32 %v655_v27 }
 0x863   :  { %v1191_v28 = vpop.eup %1190 }
 0x864   :  { %v646_v29 = vadd.f32 1.0, %v1191_v28 }
 0x865   :  { %v1193_v30 = vpop.eup %1192 }
 0x866   :  { %1194 = vrcp.f32 %v646_v29  ;;  %v657_v31 = vsub.f32 %v1388_v13, %v1193_v30 }
 0x870   :  { %v1195_v32 = vpop.eup %1194 }
 0x871   :  { %v658_v34 = vmul.f32 %v1195_v32, %v657_v31 }
 0x873   :  { %v659_v35 = vadd.f32 %v1193_v30, %v658_v34 }
 0x875   :  { %1069 = vmatmul.mubr.msk.f32.vlgmr.msra.gmra.mrb[6].mxu0 %vm29_vm1, %v659_v35 }
 0x948   :  { %v732_v36 = vpop.f32.mrb[6].mxu0 }
 0x949   :  { %v754_v37 = vadd.f32 %v732_v36, %v1283_v9  ;;  %744 = vrot.lane.b32.xlu1 %v732_v36, %s1220_s1  ;;  %v1070_v38 = vpop.f32.mrb[7].mxu0  ;;  %v736_v40 = vadd.f32 %v732_v36, %v660_v39 }
 0x94b   :  { %756 = vrot.lane.b32.xlu0 %v754_v37, %s1219_s22  ;;  %v946_v41 = vmul.f32 -1.442695, %v736_v40 }
 0x94d   :  { %1196 = vpow2.f32 %v946_v41 }
 0x957   :  { %v1197_v42 = vpop.eup %1196 }
 0x958   :  { %v740_v43 = vadd.f32 1.0, %v1197_v42 }
 0x95a   :  { %1198 = vrcp.f32 %v740_v43 }
 0x964   :  { %v1199_v50 = vpop.eup %1198 }
 0x9bb   :  { %v745_v45 = vpop.permute.xlu1 %744 }
 0x9bc   :  { %v747_v46 = vadd.f32 %v943_v44, %v745_v45 }
 0x9bd   :  { %v757_v49 = vpop.permute.xlu0 %756 }
 0x9be   :  { %v947_v48 = vmul.f32 -1.442695, %v747_v46  ;;  %v759_v51 = vmul.f32 %v1199_v50, %v757_v49 }
 0x9c0   :  { %1200 = vpow2.f32 %v947_v48  ;;  %v760_v53 = vadd.f32 %v944_v52, %v759_v51 }
 0x9c2   :  { %1202 = vtanh.f32 %v760_v53 }
 0x9ca   :  { %v1201_v54 = vpop.eup %1200 }
 0x9cb   :  { %v751_v55 = vadd.f32 1.0, %v1201_v54 }
 0x9cc   :  { %v1203_v56 = vpop.eup %1202 }
 0x9cd   :  { %1204 = vrcp.f32 %v751_v55  ;;  %v762_v58 = vsub.f32 %v659_v35, %v1203_v56 }
 0x9d7   :  { %v1205_v59 = vpop.eup %1204 }
 0x9d8   :  { %v763_v60 = vmul.f32 %v1205_v59, %v762_v58 }
 0x9da   :  { %v764_v61 = vadd.f32 %v1203_v56, %v763_v60 }
 0x9dc   :  { %1080 = vmatmul.mubr.msk.f32.vlgmr.msra.gmra.mrb[6].mxu1 %vm29_vm1, %v764_v61 }
 0xaaf   :  { %v837_v62 = vpop.f32.mrb[6].mxu1 }
 0xab0   :  { %v859_v63 = vadd.f32 %v837_v62, %v1283_v9  ;;  %849 = vrot.lane.b32.xlu1 %v837_v62, %s1220_s1  ;;  %v1081_v1 = vpop.f32.mrb[7].mxu1  ;;  %v765_v9 = vld [vmem:[%s1452_s0 + $0xe] sm:$0x3] }
 0xab1   :  { %v841_v2 = vadd.f32 %v837_v62, %v765_v9 }
 0xab2   :  { %861 = vrot.lane.b32.xlu0 %v859_v63, %s1219_s22 }
 0xab3   :  { %v951_v3 = vmul.f32 -1.442695, %v841_v2 }
 0xab4   :  { %870 = vrot.lane.b32.xlu1 %v1320_v57, %s1221_s10  ;;  %v948_v57 = vld [vmem:[%s1452_s0 + $0x1e] sm:$0x3] }
 0xab5   :  { %1206 = vpow2.f32 %v951_v3 }
 0xab6   :  { %879 = vrot.lane.b32.xlu0 %v659_v35, %s1221_s10 }
 0xab8   :  { %873 = vrot.lane.b32.xlu1 %v1343_v22, %s1219_s22 }
 0xaba   :  { %882 = vrot.lane.b32.xlu0 %v764_v61, %s1219_s22 }
 0xabc   :  { %876 = vrot.lane.b32.xlu1 %v1366_v47, %s1220_s1 }
 0xabf   :  { %v1207_v6 = vpop.eup %1206 }
 0xac0   :  { %v845_v7 = vadd.f32 1.0, %v1207_v6 }
 0xac2   :  { %1208 = vrcp.f32 %v845_v7 }
 0xacc   :  { %v1209_v14 = vpop.eup %1208 }
 0xb22   :  { %v850_v22 = vpop.permute.xlu1 %849 }
 0xb23   :  { %v852_v10 = vadd.f32 %v948_v57, %v850_v22 }
 0xb24   :  { %v862_v12 = vpop.permute.xlu0 %861 }
 0xb25   :  { %v952_v11 = vmul.f32 -1.442695, %v852_v10  ;;  %v864_v47 = vmul.f32 %v1209_v14, %v862_v12 }
 0xb26   :  { %v871_v20 = vpop.permute.xlu1 %870 }
 0xb27   :  { %1210 = vpow2.f32 %v952_v11  ;;  %v865_v16 = vadd.f32 %v949_v15, %v864_v47  ;;  %v889_v26 = vsel %vm29_vm1, %v1297_v33, %v871_v20 }
 0xb28   :  { %v880_v21 = vpop.permute.xlu0 %879 }
 0xb29   :  { %1212 = vtanh.f32 %v865_v16  ;;  %v894_v27 = vsel %vm29_vm1, %v1388_v13, %v880_v21 }
 0xb2a   :  { %v874_v23 = vpop.permute.xlu1 %873 }
 0xb2b   :  { %v891_v28 = vsel %vm890_vm2, %v889_v26, %v874_v23 }
 0xb2c   :  { %v883_v24 = vpop.permute.xlu0 %882 }
 0xb2d   :  { %v895_v29 = vsel %vm890_vm2, %v894_v27, %v883_v24 }
 0xb2e   :  { %v877_v25 = vpop.permute.xlu1 %876 }
 0xb2f   :  { %v893_v31 = vsel %vm892_vm3, %v891_v28, %v877_v25 }
 0xb31   :  { %v1211_v17 = vpop.eup %1210 }
 0xb32   :  { %v856_v5 = vadd.f32 1.0, %v1211_v17 }
 0xb33   :  { %v1213_v18 = vpop.eup %1212 }
 0xb34   :  { %1214 = vrcp.f32 %v856_v5  ;;  %v867_v4 = vsub.f32 %v764_v61, %v1213_v18 }
 0xb3e   :  { %v1215_v19 = vpop.eup %1214 }
 0xb3f   :  { %v868_v0 = vmul.f32 %v1215_v19, %v867_v4 }
 0xb41   :  { %v869_v8 = vadd.f32 %v1213_v18, %v868_v0 }
 0xb43   :  { %886 = vrot.lane.b32.xlu0 %v869_v8, %s1220_s1 }
 0xbb5   :  { %v887_v30 = vpop.permute.xlu0 %886 }
 0xbb6   :  { %v896_v32 = vsel %vm892_vm3, %v895_v29, %v887_v30 }
 0xbb7   :  { %v899_v34 = vcombine.low %v893_v31, %v896_v32 }
 0xbb9   :  { %953 = vst.sshfl [vmem:[%s1453_s3] sm:$0x33 pattern:$0x76325410] %v899_v34 }

</bundles_post_ra>
